<compile_context>
chip_gen: v5e
topology: v5e:2x2
jax: 0.10.0
libtpu: 0.0.40
codegen_flags: <defaults>
</compile_context>

<pallas_src>
import functools

import jax
import jax.numpy as jnp
from jax.experimental import pallas as pl
from jax.experimental.pallas import tpu as pltpu

_LANE = 128        # vreg lane width
_SEG_ALIGN = 16    # bf16 sublane tile height; used for slab / batch / K alignment
_MAX_TB = 512      # batch-tile row cap (per perf review: sweep 512-1024)


def _round_up(n, m):
    return ((n + m - 1) // m) * m


def _policy_mlp_kernel(params_ref, x_ref, out_ref, *, layer_offs, o_real):
    """Fused MLP forward on one batch tile.

    params_ref: [rows, 128] bf16 packed (W, b) slab, zero-padded to 128 lanes.
    x_ref:      [TB, I_pad] f32 activations.
    out_ref:    [TB, 128] f32 lane-dense softmax output (cols >= o_real ~ 0).
    layer_offs: static tuple of (w_row_offset, w_rows_alloc, b_row_offset).
    """
    h = x_ref[...]                                   # f32
    n_layers = len(layer_offs)
    for li, (w_off, w_rows, b_off) in enumerate(layer_offs):
        w = params_ref[w_off:w_off + w_rows, :]      # bf16, tile-aligned slice
        b = params_ref[b_off:b_off + 1, :]           # bf16 [1, 128] broadcast row
        # bf16 MXU operands, f32 accumulation; elementwise work stays in f32.
        h = jnp.dot(h.astype(w.dtype), w,
                    preferred_element_type=jnp.float32) + b.astype(jnp.float32)
        if li < n_layers - 1:
            h = jnp.maximum(h, 0.0)
            # TODO(synk): training-mode Dropout(0.1) would use pltpu.prng_* here
            # (eval-mode dropout is identity, which is what we implement).

    # Mask padded output lanes so the softmax reductions only see real logits.
    col = jax.lax.broadcasted_iota(jnp.int32, h.shape, 1)
    logits = jnp.where(col < o_real, h, -1e30)

    # Numerically stable softmax; EXACT reciprocal so rows sum to 1.
    m = jnp.max(logits, axis=-1, keepdims=True)
    e = jnp.exp(logits - m)
    denom = jnp.sum(e, axis=-1, keepdims=True)
    inv = pl.reciprocal(denom, approx=False)
    out_ref[...] = (e * inv).astype(out_ref.dtype)


def pack_params(params, input_size, hidden_sizes, output_size,
                *, param_dtype=jnp.bfloat16):
    """Pack all (W, b) into one [rows, 128] slab (built once at init).

    Weights are stored [in_features, out_features] (transposed vs. nn.Linear),
    zero-padded to 128 output lanes; layers after the first are zero-padded to
    128 input rows because activations flow through the kernel as lane-dense
    [TB, 128] tiles.  Every segment starts on a 16-row boundary so in-kernel
    slices stay (16,128) bf16-tile aligned.
    """
    sizes = [input_size] + list(hidden_sizes) + [output_size]
    assert all(s <= _LANE for s in sizes[1:]), "hidden/output sizes must be <= 128"
    n_layers = len(sizes) - 1

    segs, layer_offs = [], []
    row = 0
    for i in range(1, n_layers + 1):
        w = params[f"w{i}"].astype(jnp.float32)   # [fan_in, fan_out]
        b = params[f"b{i}"].astype(jnp.float32)   # [1, fan_out]
        # Layer 1 consumes the (16-rounded) real input width; later layers
        # consume the 128-lane padded activations.
        fan_in = w.shape[0] if i == 1 else _LANE
        w_rows_alloc = _round_up(fan_in, _SEG_ALIGN)

        wp = jnp.zeros((w_rows_alloc, _LANE), jnp.float32)
        wp = wp.at[:w.shape[0], :w.shape[1]].set(w)
        bp = jnp.zeros((_SEG_ALIGN, _LANE), jnp.float32)
        bp = bp.at[:1, :b.shape[1]].set(b)

        layer_offs.append((row, w_rows_alloc, row + w_rows_alloc))
        segs.extend([wp, bp])
        row += w_rows_alloc + _SEG_ALIGN

    packed = jnp.concatenate(segs, axis=0).astype(param_dtype)
    return packed, tuple(layer_offs)


def policy_network_forward(x, packed, layer_offs, *, output_size,
                           return_padded=False):
    """Run the fused Pallas kernel.

    x:          [B, input_size] float32
    packed:     [rows, 128] bf16 packed parameter slab (from pack_params)
    layer_offs: static offsets returned by pack_params
    returns     [B, output_size] f32 softmax probs (or the padded [B_pad, 128]
                block when return_padded=True, avoiding the wrapper slice).
    """
    B, I = x.shape
    I_pad = _round_up(I, _SEG_ALIGN)
    if I_pad != I:
        x = jnp.pad(x, ((0, 0), (0, I_pad - I)))

    # Batch tiling: large tiles (<=512 rows) to amortize the ~0.35us/step
    # pipeline overhead; >=2 tiles for moderate batches so both v7x TCs work.
    n_tiles = max(1, -(-B // _MAX_TB))
    if B > 16:
        n_tiles = max(n_tiles, 2)
    TB = _round_up(-(-B // n_tiles), _SEG_ALIGN)
    B_pad = _round_up(B, TB)
    if B_pad != B:
        x = jnp.pad(x, ((0, B_pad - B), (0, 0)))
    grid = (B_pad // TB,)

    kernel = functools.partial(
        _policy_mlp_kernel, layer_offs=layer_offs, o_real=output_size)

    n_layers = len(layer_offs)
    cost = pl.CostEstimate(
        flops=2 * B_pad * (I_pad * _LANE + (n_layers - 1) * _LANE * _LANE),
        transcendentals=B_pad * (_LANE + 1),                  # exp + reciprocal
        bytes_accessed=(x.dtype.itemsize * B_pad * I_pad
                        + packed.dtype.itemsize * packed.size
                        + 4 * B_pad * _LANE),
    )

    out = pl.pallas_call(
        kernel,
        out_shape=jax.ShapeDtypeStruct((B_pad, _LANE), jnp.float32),
        grid=grid,
        in_specs=[
            # Single resident parameter slab: fetched once, same block each step.
            pl.BlockSpec(packed.shape, lambda b: (0, 0)),
            # Batch-tiled activations: double-buffered across the grid.
            pl.BlockSpec((TB, I_pad), lambda b: (b, 0)),
        ],
        # Lane-dense output block (last dim = 128 -> unmasked stores).
        out_specs=pl.BlockSpec((TB, _LANE), lambda b: (b, 0)),
        compiler_params=pltpu.CompilerParams(
            dimension_semantics=("parallel",)),
        cost_estimate=cost,
    )(packed, x)

    if return_padded:
        return out
    return out[:B, :output_size]


def init_params(key, input_size, hidden_sizes, output_size):
    """Deterministic PyTorch-nn.Linear-style init (uniform(-1/sqrt(in), 1/sqrt(in)))."""
    sizes = [input_size] + list(hidden_sizes) + [output_size]
    params = {}
    for i, (fan_in, fan_out) in enumerate(zip(sizes[:-1], sizes[1:]), start=1):
        key, kw, kb = jax.random.split(key, 3)
        bound = 1.0 / jnp.sqrt(fan_in)
        params[f"w{i}"] = jax.random.uniform(
            kw, (fan_in, fan_out), jnp.float32, minval=-bound, maxval=bound)
        params[f"b{i}"] = jax.random.uniform(
            kb, (1, fan_out), jnp.float32, minval=-bound, maxval=bound)
    return params


def _reference_forward_f32(x, params, n_layers):
    """Pure f32 reference (matches the PyTorch module in eval mode)."""
    h = x
    for i in range(1, n_layers + 1):
        h = h @ params[f"w{i}"] + params[f"b{i}"]
        if i < n_layers:
            h = jnp.maximum(h, 0.0)
    return jax.nn.softmax(h, axis=-1)


def _reference_forward_bf16_matched(x, params, n_layers):
    """Reference with the same bf16 dot-operand rounding the kernel applies."""
    h = x
    for i in range(1, n_layers + 1):
        w = params[f"w{i}"].astype(jnp.bfloat16)
        b = params[f"b{i}"].astype(jnp.bfloat16).astype(jnp.float32)
        h = jnp.dot(h.astype(jnp.bfloat16), w,
                    preferred_element_type=jnp.float32) + b
        if i < n_layers:
            h = jnp.maximum(h, 0.0)
    return jax.nn.softmax(h, axis=-1)


if __name__ == "__main__":
    # network_config = {'input_size': 32, 'hidden_sizes': [64, 64],
    #                   'policy_output_size': 16}
    INPUT_SIZE = 32
    HIDDEN_SIZES = [64, 64]
    OUTPUT_SIZE = 16
    N_LAYERS = len(HIDDEN_SIZES) + 1

    key = jax.random.PRNGKey(0)
    key, kx1, kx2 = jax.random.split(key, 3)
    params = init_params(key, INPUT_SIZE, HIDDEN_SIZES, OUTPUT_SIZE)
    packed, layer_offs = pack_params(params, INPUT_SIZE, HIDDEN_SIZES, OUTPUT_SIZE)

    # Case 1: tiny batch (single grid step, as in the original training script).
    x_small = jax.random.normal(kx1, (8, INPUT_SIZE), dtype=jnp.float32)
    # Case 2: moderate batch (exercises >=2 grid steps + batch padding path).
    x_big = jax.random.normal(kx2, (200, INPUT_SIZE), dtype=jnp.float32)

    for x in (x_small, x_big):
        out = policy_network_forward(x, packed, layer_offs, output_size=OUTPUT_SIZE)
        out = jax.block_until_ready(out)

        ref32 = _reference_forward_f32(x, params, N_LAYERS)
        ref16 = _reference_forward_bf16_matched(x, params, N_LAYERS)

        assert out.shape == (x.shape[0], OUTPUT_SIZE)
        # Exact normalization -> rows sum to 1 to f32 precision.
        assert jnp.allclose(jnp.sum(out, axis=-1), 1.0, atol=1e-4)
        # Tight match against the bf16-operand-matched reference.
        assert jnp.allclose(out, ref16, atol=1e-3, rtol=1e-3)
        # Sanity match against the pure-f32 module reference.
        assert jnp.allclose(out, ref32, atol=1e-2, rtol=1e-2)

    print("KERNEL_OK")
</pallas_src>

<mosaic_0001>
module attributes {stable_mosaic.version = 11 : i64} {
  func.func @_policy_mlp_kernel(%arg0: i32, %arg1: memref<336x128xbf16, #tpu.memory_space<vmem>>, %arg2: memref<16x32xf32, #tpu.memory_space<vmem>>, %arg3: memref<16x128xf32, #tpu.memory_space<vmem>>) attributes {dimension_semantics = [#tpu.dimension_semantics<parallel>], iteration_bounds = array<i64: 1>, scalar_prefetch = 0 : i64, scratch_operands = 0 : i64, tpu.core_type = #tpu.core_type<tc>, window_params = [{pipeline_mode = #tpu.pipeline_mode<synchronous>, transform_indices = @transform_0, window_bounds = array<i64: 336, 128>}, {transform_indices = @transform_1, window_bounds = array<i64: 16, 32>}, {transform_indices = @transform_2, window_bounds = array<i64: 16, 128>}]} {
    %c0 = arith.constant 0 : index
    %c0_0 = arith.constant 0 : index
    %0 = vector.load %arg2[%c0, %c0_0] : memref<16x32xf32, #tpu.memory_space<vmem>>, vector<16x32xf32>
    %c0_1 = arith.constant 0 : index
    %c0_2 = arith.constant 0 : index
    %1 = vector.load %arg1[%c0_1, %c0_2] : memref<336x128xbf16, #tpu.memory_space<vmem>>, vector<32x128xbf16>
    %c32 = arith.constant 32 : index
    %c0_3 = arith.constant 0 : index
    %2 = vector.load %arg1[%c32, %c0_3] : memref<336x128xbf16, #tpu.memory_space<vmem>>, vector<1x128xbf16>
    %3 = arith.truncf %0 : vector<16x32xf32> to vector<16x32xbf16>
    %cst = arith.constant dense<0.000000e+00> : vector<16x128xf32>
    %4 = tpu.matmul %3, %1, %cst {dimension_numbers = #tpu.dot_dimension_numbers<[1], [0], [0], [1], [0, 0, 1, 1], [], []>} : vector<16x32xbf16>, vector<32x128xbf16>, vector<16x128xf32> -> vector<16x128xf32>
    %5 = arith.extf %2 : vector<1x128xbf16> to vector<1x128xf32>
    %6 = vector.broadcast %5 : vector<1x128xf32> to vector<16x128xf32>
    %7 = arith.addf %4, %6 : vector<16x128xf32>
    %cst_4 = arith.constant 0.000000e+00 : f32
    %8 = vector.broadcast %cst_4 : f32 to vector<16x128xf32>
    %9 = arith.maximumf %7, %8 : vector<16x128xf32>
    %c48 = arith.constant 48 : index
    %c0_5 = arith.constant 0 : index
    %10 = vector.load %arg1[%c48, %c0_5] : memref<336x128xbf16, #tpu.memory_space<vmem>>, vector<128x128xbf16>
    %c176 = arith.constant 176 : index
    %c0_6 = arith.constant 0 : index
    %11 = vector.load %arg1[%c176, %c0_6] : memref<336x128xbf16, #tpu.memory_space<vmem>>, vector<1x128xbf16>
    %12 = arith.truncf %9 : vector<16x128xf32> to vector<16x128xbf16>
    %cst_7 = arith.constant dense<0.000000e+00> : vector<16x128xf32>
    %13 = tpu.matmul %12, %10, %cst_7 {dimension_numbers = #tpu.dot_dimension_numbers<[1], [0], [0], [1], [0, 0, 1, 1], [], []>} : vector<16x128xbf16>, vector<128x128xbf16>, vector<16x128xf32> -> vector<16x128xf32>
    %14 = arith.extf %11 : vector<1x128xbf16> to vector<1x128xf32>
    %15 = vector.broadcast %14 : vector<1x128xf32> to vector<16x128xf32>
    %16 = arith.addf %13, %15 : vector<16x128xf32>
    %cst_8 = arith.constant 0.000000e+00 : f32
    %17 = vector.broadcast %cst_8 : f32 to vector<16x128xf32>
    %18 = arith.maximumf %16, %17 : vector<16x128xf32>
    %c192 = arith.constant 192 : index
    %c0_9 = arith.constant 0 : index
    %19 = vector.load %arg1[%c192, %c0_9] : memref<336x128xbf16, #tpu.memory_space<vmem>>, vector<128x128xbf16>
    %c320 = arith.constant 320 : index
    %c0_10 = arith.constant 0 : index
    %20 = vector.load %arg1[%c320, %c0_10] : memref<336x128xbf16, #tpu.memory_space<vmem>>, vector<1x128xbf16>
    %21 = arith.truncf %18 : vector<16x128xf32> to vector<16x128xbf16>
    %cst_11 = arith.constant dense<0.000000e+00> : vector<16x128xf32>
    %22 = tpu.matmul %21, %19, %cst_11 {dimension_numbers = #tpu.dot_dimension_numbers<[1], [0], [0], [1], [0, 0, 1, 1], [], []>} : vector<16x128xbf16>, vector<128x128xbf16>, vector<16x128xf32> -> vector<16x128xf32>
    %23 = arith.extf %20 : vector<1x128xbf16> to vector<1x128xf32>
    %24 = vector.broadcast %23 : vector<1x128xf32> to vector<16x128xf32>
    %25 = arith.addf %22, %24 : vector<16x128xf32>
    %26 = tpu.iota {dimensions = array<i32: 1>} : vector<16x128xi32>
    %c16_i32 = arith.constant 16 : i32
    %27 = vector.broadcast %c16_i32 : i32 to vector<16x128xi32>
    %28 = arith.cmpi slt, %26, %27 : vector<16x128xi32>
    %cst_12 = arith.constant -1.000000e+30 : f32
    %29 = vector.broadcast %cst_12 : f32 to vector<16x128xf32>
    %30 = arith.select %28, %25, %29 : vector<16x128xi1>, vector<16x128xf32>
    %cst_13 = arith.constant dense<0xFF800000> : vector<16xf32>
    %31 = vector.multi_reduction <maximumf>, %30, %cst_13 [1] : vector<16x128xf32> to vector<16xf32>
    %32 = vector.shape_cast %31 : vector<16xf32> to vector<16x1xf32>
    %33 = vector.broadcast %32 : vector<16x1xf32> to vector<16x128xf32>
    %34 = arith.subf %30, %33 : vector<16x128xf32>
    %35 = math.exp %34 : vector<16x128xf32>
    %cst_14 = arith.constant dense<0.000000e+00> : vector<16xf32>
    %36 = vector.multi_reduction <add>, %35, %cst_14 [1] : vector<16x128xf32> to vector<16xf32>
    %37 = vector.shape_cast %36 : vector<16xf32> to vector<16x1xf32>
    %38 = tpu.reciprocal %37 : vector<16x1xf32> -> vector<16x1xf32>
    %39 = vector.broadcast %38 : vector<16x1xf32> to vector<16x128xf32>
    %40 = arith.mulf %35, %39 : vector<16x128xf32>
    %c0_15 = arith.constant 0 : index
    %c0_16 = arith.constant 0 : index
    %41 = vector.load %arg3[%c0_15, %c0_16] : memref<16x128xf32, #tpu.memory_space<vmem>>, vector<16x128xf32>
    tpu.vector_store %arg3[%c0_15, %c0_16], %40 {strides = array<i32>} : memref<16x128xf32, #tpu.memory_space<vmem>>, vector<16x128xf32>,
    return
  }
  func.func @transform_0(%arg0: i32) -> (i32, i32) {
    %c0_i32 = arith.constant 0 : i32
    %c0_i32_0 = arith.constant 0 : i32
    %c0_i32_1 = arith.constant 0 : i32
    return %c0_i32, %c0_i32_0 : i32, i32
  }
  func.func @transform_1(%arg0: i32) -> (i32, i32) {
    %c0_i32 = arith.constant 0 : i32
    %c0_i32_0 = arith.constant 0 : i32
    return %arg0, %c0_i32 : i32, i32
  }
  func.func @transform_2(%arg0: i32) -> (i32, i32) {
    %c0_i32 = arith.constant 0 : i32
    %c0_i32_0 = arith.constant 0 : i32
    return %arg0, %c0_i32 : i32, i32
  }
}

</mosaic_0001>

<bundles_post_ra>
// kernel: tpu_custom_call.1
= control target key start
LH: loop header
LB: loop body
LE: loop exit
PB: predicated region body
PF: predicated region fallthrough
CT: control target
= control target key end

     0   :  { %7 = vsyncpa [#allocation3], 0  ;;  %s545_s0 = inlined_call_operand.hbm [shape: bf16[336,128], index: 0, kind: input, shape index: {}]   ;;  %s546_s1 = inlined_call_operand.hbm [shape: f32[16,32], index: 1, kind: input, shape index: {}]   ;;  %s547_s2 = inlined_call_operand.hbm [shape: f32[16,128], index: 2, kind: output, shape index: {}]  }
   0x1   :  { %8 = vsyncpa [#allocation6], 0 }
   0x2   :  { %9 = vsyncpa [#allocation4], 0  ;;  %s14_s11 = sshll.u32 %s545_s0, 4  ;;  %s508_s12 = smov [#allocation2]   ;;  %s15_s11 = int_to_ptr.hbm [resolvable:$true] %s14_s11 }
   0x3   :  { %s16_s13 = sshll.u32 %s508_s12, 4  ;;  %s27_s16 = sshll.u32 %s546_s1, 4  ;;  %s17_s13 = int_to_ptr.vmem [resolvable:$true] %s16_s13  ;;  %s28_s16 = int_to_ptr.hbm [resolvable:$true] %s27_s16 }
   0x4   :  { %s509_s17 = smov 64   ;;  %s510_s18 = smov 4  }
   0x5   :  { %22 = dma.hbm_to_vmem [thread:$0]  %s15_s11, 2688, %s17_s13, [#allocation3], %s509_s17, %s509_s17, %s510_s18  }
   0x6   :  { %s511_s19 = smov [#allocation5]   ;;  %s512_s21 = smov 128  }
   0x7   :  { %s29_s20 = sshll.u32 %s511_s19, 4  ;;  %s513_s22 = smov 8   ;;  %s30_s20 = int_to_ptr.vmem [resolvable:$true] %s29_s20 }
   0x8   :  { %35 = dma.hbm_to_vmem [thread:$0]  %s28_s16, 256, %s30_s20, [#allocation6], %s512_s21, %s512_s21, %s513_s22  }
   0x9   :  { %502 = dma.done.wait [#allocation3], 2688  }
   0xa   :  { %503 = vsyncadd [#allocation3], 4294964608 }
   0xb   :  { %504 = dma.done.wait [#allocation6], 256  }
   0xc   :  { %505 = vsyncadd [#allocation6], 4294967040  ;;  %v398_v0 = vld [vmem:[#allocation2 + $0x8] sm:$0xff]  ;;  %v406_v1 = vld [vmem:[#allocation2 + $0x50] sm:$0xff]  ;;  %vm67_vm0 = vcmask 261120   ;;  %v253_v42 = vlaneseq  ;;  %s514_s0 = smov [#allocation7]  }
   0xd   :  { %77 = vmatpush.bf16.msra.mxu0 %v398_v0  ;;  %v397_v2 = vld [vmem:[#allocation2] sm:$0xff]  ;;  %v45_v3 = vld [vmem:[#allocation5] sm:$0xff]  ;;  %v46_v4 = vld [vmem:[#allocation5 + $0x8] sm:$0xff]  ;;  %155 = vmatpush.bf16.msra.mxu1 %v406_v1  ;;  %s308_s1 = sshll.u32 %s514_s0, 4  ;;  %s310_s25 = sshll.u32 %s547_s2, 4  ;;  %s309_s1 = int_to_ptr.vmem [resolvable:$true] %s308_s1  ;;  %s311_s25 = int_to_ptr.hbm [resolvable:$true] %s310_s25 }
   0xe   :  { %v405_v5 = vld [vmem:[#allocation2 + $0x48] sm:$0xff]  ;;  %v52_v6 = vpack.c.bf16 %v46_v4, %v45_v3  ;;  %v404_v7 = vld [vmem:[#allocation2 + $0x40] sm:$0xff]  ;;  %v403_v8 = vld [vmem:[#allocation2 + $0x38] sm:$0xff]  ;;  %v254_v44 = vand.u32 127, %v253_v42 }
   0xf   :  { %v402_v9 = vld [vmem:[#allocation2 + $0x30] sm:$0xff]  ;;  %v401_v10 = vld [vmem:[#allocation2 + $0x28] sm:$0xff]  ;;  %v400_v11 = vld [vmem:[#allocation2 + $0x20] sm:$0xff] }
  0x10   :  { %v399_v12 = vld [vmem:[#allocation2 + $0x18] sm:$0xff]  ;;  %v413_v14 = vld [vmem:[#allocation2 + $0x90] sm:$0xff]  ;;  %v412_v15 = vld [vmem:[#allocation2 + $0x88] sm:$0xff]  ;;  %vm255_vm1 = vcmp.lt.s32.totalorder %v254_v44, 16 }
  0x11   :  { %78 = vmatpush.bf16.msra.mxu0 %v397_v2  ;;  %156 = vmatpush.bf16.msra.mxu1 %v405_v5  ;;  %v414_v13 = vld [vmem:[#allocation2 + $0x98] sm:$0xff]  ;;  %v411_v16 = vld [vmem:[#allocation2 + $0x80] sm:$0xff]  ;;  %v51_v17 = vld [vmem:[#allocation2 + $0x10] sm:$0x1] }
  0x12   :  { %239 = vmatpush.bf16.msra.mxu2 %v414_v13  ;;  %v53_v18 = vunpack.c.l.bf16 %v51_v17  ;;  %v410_v27 = vld [vmem:[#allocation2 + $0x78] sm:$0xff]  ;;  %v409_v28 = vld [vmem:[#allocation2 + $0x70] sm:$0xff]  ;;  %v408_v29 = vld [vmem:[#allocation2 + $0x68] sm:$0xff] }
  0x13   :  { %v407_v30 = vld [vmem:[#allocation2 + $0x60] sm:$0xff]  ;;  %v103_v31 = vld [vmem:[#allocation2 + $0x58] sm:$0x1] }
  0x14   :  { %332 = vmatmul.msk.bf16.vlgmr.msra.gmra.mxu0 %vm67_vm0, %v52_v6  ;;  %v54_v20 = vperm.slane %v53_v18, 0  ;;  %v105_v32 = vunpack.c.l.bf16 %v103_v31  ;;  %v187_v41 = vld [vmem:[#allocation2 + $0xa0] sm:$0x1] }
  0x15   :  { %157 = vmatpush.bf16.msra.mxu1 %v404_v7  ;;  %v189_v43 = vunpack.c.l.bf16 %v187_v41 }
  0x16   :  { %240 = vmatpush.bf16.msra.mxu2 %v413_v14  ;;  %v106_v34 = vperm.slane %v105_v32, 0 }
  0x17   :  { %v190_v45 = vperm.slane %v189_v43, 0 }
  0x19   :  { %158 = vmatpush.bf16.msra.mxu1 %v403_v8 }
  0x1a   :  { %241 = vmatpush.bf16.msra.mxu2 %v412_v15 }
  0x1d   :  { %159 = vmatpush.bf16.msra.mxu1 %v402_v9 }
  0x1e   :  { %242 = vmatpush.bf16.msra.mxu2 %v411_v16 }
  0x21   :  { %160 = vmatpush.bf16.msra.mxu1 %v401_v10 }
  0x22   :  { %243 = vmatpush.bf16.msra.mxu2 %v410_v27 }
  0x25   :  { %161 = vmatpush.bf16.msra.mxu1 %v400_v11 }
  0x26   :  { %244 = vmatpush.bf16.msra.mxu2 %v409_v28 }
  0x29   :  { %162 = vmatpush.bf16.msra.mxu1 %v399_v12 }
  0x2a   :  { %245 = vmatpush.bf16.msra.mxu2 %v408_v29 }
  0x2e   :  { %246 = vmatpush.bf16.msra.mxu2 %v407_v30 }
  0x91   :  { %v80_v19 = vpop.f32.mrf.mxu0 }
  0x92   :  { %v81_v21 = vadd.f32 %v80_v19, %v54_v20 }
  0x94   :  { %v85_v24 = vmax.f32 %v81_v21, 0.0 }
  0x99   :  { %v82_v22 = vpop.f32.mrf.mxu0 }
  0x9a   :  { %v83_v23 = vadd.f32 %v82_v22, %v54_v20 }
  0x9c   :  { %v86_v25 = vmax.f32 %v83_v23, 0.0 }
  0x9e   :  { %v104_v26 = vpack.c.bf16 %v86_v25, %v85_v24 }
  0xa0   :  { %163 = vmatmul.bf16.vlgmr.msra.gmra.mxu1 %v104_v26 }
 0x11d   :  { %v164_v33 = vpop.f32.mrf.mxu1 }
 0x11e   :  { %v165_v35 = vadd.f32 %v164_v33, %v106_v34 }
 0x120   :  { %v169_v38 = vmax.f32 %v165_v35, 0.0 }
 0x125   :  { %v166_v36 = vpop.f32.mrf.mxu1 }
 0x126   :  { %v167_v37 = vadd.f32 %v166_v36, %v106_v34 }
 0x128   :  { %v170_v39 = vmax.f32 %v167_v37, 0.0 }
 0x12a   :  { %v188_v40 = vpack.c.bf16 %v170_v39, %v169_v38 }
 0x12c   :  { %247 = vmatmul.bf16.vlgmr.msra.gmra.mxu2 %v188_v40 }
 0x1af   :  { %v248_v46 = vpop.f32.mrf.mxu2 }
 0x1b0   :  { %v249_v47 = vadd.f32 %v248_v46, %v190_v45 }
 0x1b2   :  { %v256_v48 = vsel %vm255_vm1, %v249_v47, -1e+30 }
 0x1b3   :  { %258 = vmax.xlane.f32.xlu0 %v256_v48 }
 0x1b7   :  { %v250_v49 = vpop.f32.mrf.mxu2 }
 0x1b8   :  { %v251_v50 = vadd.f32 %v250_v49, %v190_v45 }
 0x1ba   :  { %v257_v51 = vsel %vm255_vm1, %v251_v50, -1e+30 }
 0x1bb   :  { %260 = vmax.xlane.f32.xlu0 %v257_v51 }
 0x226   :  { %v259_v52 = vpop.xlane.xlu0 %258 }
 0x227   :  { %v262_v53 = vsub.f32 %v256_v48, %v259_v52 }
 0x229   :  { %v264_v54 = vmul.f32 1.442695, %v262_v53 }
 0x22b   :  { %422 = vpow2.f32 %v264_v54 }
 0x22e   :  { %v261_v55 = vpop.xlane.xlu0 %260 }
 0x22f   :  { %v263_v56 = vsub.f32 %v257_v51, %v261_v55 }
 0x231   :  { %v423_v57 = vpop.eup %422  ;;  %v266_v58 = vmul.f32 1.442695, %v263_v56 }
 0x232   :  { %268 = vadd.xlane.f32.xlu1 %v423_v57 }
 0x233   :  { %424 = vpow2.f32 %v266_v58 }
 0x239   :  { %v425_v59 = vpop.eup %424 }
 0x23a   :  { %270 = vadd.xlane.f32.xlu1 %v425_v59 }
 0x2a5   :  { %v269_v60 = vpop.xlane.xlu1 %268 }
 0x2a6   :  { %426 = vrcp.f32 %v269_v60  ;;  %v283_v1 = vand.u32 2147483648, %v269_v60  ;;  %v281_v3 = vand.u32 2147483647, %v269_v60  ;;  %vm277_vm3 = vweird.f32 %v269_v60 }
 0x2a8   :  { %v284_v6 = vor.u32 1.1754944e-38, %v283_v1  ;;  %vm282_vm5 = vcmp.eq.f32.partialorder %v281_v3, 8.507059e+37 }
 0x2ac   :  { %v427_v61 = vpop.eup %426 }
 0x2ad   :  { %v273_v62 = vmul.f32 %v427_v61, %v269_v60  ;;  %v271_v63 = vpop.xlane.xlu1 %270  ;;  %vm278_vm2 = vweird.f32 %v427_v61 }
 0x2ae   :  { %428 = vrcp.f32 %v271_v63  ;;  %vm279_vm4 = vmor %vm277_vm3, %vm278_vm2  ;;  %v297_v12 = vand.u32 2147483648, %v271_v63  ;;  %v295_v14 = vand.u32 2147483647, %v271_v63  ;;  %vm291_vm7 = vweird.f32 %v271_v63 }
 0x2af   :  { %v274_v0 = vsub.f32 1.0, %v273_v62 }
 0x2b0   :  { %v298_v16 = vor.u32 1.1754944e-38, %v297_v12  ;;  %vm296_vm9 = vcmp.eq.f32.partialorder %v295_v14, 8.507059e+37 }
 0x2b1   :  { %v275_v2 = vmul.f32 %v427_v61, %v274_v0 }
 0x2b3   :  { %v276_v4 = vadd.f32 %v427_v61, %v275_v2 }
 0x2b4   :  { %v429_v5 = vpop.eup %428 }
 0x2b5   :  { %v287_v7 = vmul.f32 %v429_v5, %v271_v63  ;;  %v280_v8 = vsel %vm279_vm4, %v427_v61, %v276_v4  ;;  %vm292_vm6 = vweird.f32 %v429_v5 }
 0x2b6   :  { %v285_v9 = vsel %vm282_vm5, %v284_v6, %v280_v8  ;;  %vm293_vm8 = vmor %vm291_vm7, %vm292_vm6 }
 0x2b7   :  { %v288_v10 = vsub.f32 1.0, %v287_v7  ;;  %v300_v11 = vmul.f32 %v423_v57, %v285_v9 }
 0x2b9   :  { %v289_v13 = vmul.f32 %v429_v5, %v288_v10  ;;  %302 = vst [vmem:[#allocation7] sm:$0xff] %v300_v11 }
 0x2bb   :  { %v290_v15 = vadd.f32 %v429_v5, %v289_v13 }
 0x2bd   :  { %v294_v17 = vsel %vm293_vm8, %v429_v5, %v290_v15 }
 0x2be   :  { %v299_v18 = vsel %vm296_vm9, %v298_v16, %v294_v17 }
 0x2bf   :  { %v301_v19 = vmul.f32 %v425_v59, %v299_v18 }
 0x2c1   :  { %303 = vst [vmem:[#allocation7 + $0x8] sm:$0xff] %v301_v19 }
 0x2c2   :  { %316 = dma.vmem_to_hbm [thread:$0]  %s309_s1, 256, %s311_s25, [#allocation4], %s512_s21, %s512_s21, %s513_s22  }
 0x2c3   :  { %506 = dma.done.wait [#allocation4], 256  }
 0x2c4   :  { %507 = vsyncadd [#allocation4], 4294967040 }
 0x2c5   :  { %321 = vsyncpa [#allocation3], 1 }
 0x2c6   :  { %322 = vsyncpa [#allocation6], 1 }
 0x2c7   :  { %323 = vsyncpa [#allocation4], 1 }

</bundles_post_ra>
